<compile_context>
chip_gen: v7x
topology: tpu7x:2x2x1
jax: 0.10.0
libtpu: 0.0.40
codegen_flags: <defaults>
</compile_context>

<pallas_src>
import jax
import jax.numpy as jnp
from jax.experimental import pallas as pl
from jax.experimental.pallas import tpu as pltpu

# Small, TPU-friendly shapes consistent with the module (dim scaled down from 1024).
N = 16       # number of graph nodes
F = 8        # feature_len
DIM = 128    # gnn hidden dim
HID = 256    # output MLP hidden (fixed in the module)
NCLS = 3     # output classes (fixed in the module)
K = 2        # TAGConv hops
LANE = 128   # lane-dense output width (logits padded to 128 lanes)


def gnn_kernel(adj_ref, adj2_ref, x_ref, w0_ref, b0_ref, w1_ref, b1_ref,
               wo1_ref, bo1_ref, wo2_ref, bo2_ref, out_ref):
    adj = adj_ref[0]                          # [N, N]  = D^{-1/2} A D^{-1/2}
    adj2 = adj2_ref[0]                        # [N, N]  = (D^{-1/2} A D^{-1/2})^2
    h = x_ref[0]                              # [N, F]

    # ---- TAGConv layer 0 (k=2 hops), activation = relu ----
    # TAGConv: out = concat([h, A h, A^2 h]) @ W + b ; concat avoided by splitting W.
    # Both hop matmuls depend only on h (adj2 precomputed) -> issue back-to-back.
    w0 = w0_ref[...]                          # [3F, DIM]
    h1 = jnp.dot(adj,  h, preferred_element_type=jnp.float32)
    h2 = jnp.dot(adj2, h, preferred_element_type=jnp.float32)
    h = (jnp.dot(h,  w0[0 * F:1 * F, :], preferred_element_type=jnp.float32)
         + jnp.dot(h1, w0[1 * F:2 * F, :], preferred_element_type=jnp.float32)
         + jnp.dot(h2, w0[2 * F:3 * F, :], preferred_element_type=jnp.float32)
         + b0_ref[...])
    h = jnp.maximum(h, 0.0)                   # torch.relu

    # ---- TAGConv layer 1 (k=2 hops), no activation (last layer) ----
    # bf16 weights/activations on the K=128 contractions, f32 accumulation.
    w1 = w1_ref[...]                          # [3*DIM, DIM] bf16
    h1 = jnp.dot(adj,  h, preferred_element_type=jnp.float32)
    h2 = jnp.dot(adj2, h, preferred_element_type=jnp.float32)
    hb = h.astype(jnp.bfloat16)
    h1b = h1.astype(jnp.bfloat16)
    h2b = h2.astype(jnp.bfloat16)
    h = (jnp.dot(hb,  w1[0 * DIM:1 * DIM, :], preferred_element_type=jnp.float32)
         + jnp.dot(h1b, w1[1 * DIM:2 * DIM, :], preferred_element_type=jnp.float32)
         + jnp.dot(h2b, w1[2 * DIM:3 * DIM, :], preferred_element_type=jnp.float32)
         + b1_ref[...])

    # ---- factor = sqrt(dim) / mean(||h_i||_2); folded into the pooled embedding ----
    norms = jnp.sqrt(jnp.sum(h * h, axis=1, keepdims=True))          # [N, 1]
    mean_norm = jnp.sum(norms, axis=0, keepdims=True) * (1.0 / N)    # [1, 1]
    factor = jnp.sqrt(jnp.float32(DIM)) * pl.reciprocal(mean_norm + 1e-12, approx=True)

    # ---- dgl.nn.MaxPooling (max over nodes), scale folded in (factor > 0) ----
    emb = jnp.max(h, axis=0, keepdims=True) * factor                 # [1, DIM]

    # ---- output MLP: Linear(DIM,256) -> LeakyReLU -> Linear(256,3) -> LogSoftmax ----
    z = jnp.dot(emb.astype(jnp.bfloat16), wo1_ref[...],
                preferred_element_type=jnp.float32) + bo1_ref[...]    # [1, HID]
    z = jnp.where(z > 0, z, jnp.float32(0.01) * z)                    # LeakyReLU slope 0.01
    # wo2/bo2 are lane-padded to 128: pad lanes have zero weight and bias -1e30,
    # so the log-softmax over 128 lanes equals the log-softmax over the 3 real classes.
    z = jnp.dot(z, wo2_ref[...], preferred_element_type=jnp.float32) + bo2_ref[...]  # [1, LANE]
    zmax = jnp.max(z, axis=1, keepdims=True)
    zs = z - zmax
    lse = jnp.log(jnp.sum(jnp.exp(zs), axis=1, keepdims=True))
    out_ref[0] = zs - lse                                             # lane-dense store


def gnn_forward(adj_norm, x, params):
    """adj_norm: [B, N, N] normalized adjacency; x: [B, N, F] node features."""
    B = adj_norm.shape[0]

    # ---- JAX glue (precompute / pad / cast; negligible cost, fused by XLA) ----
    adj2 = jnp.matmul(adj_norm, adj_norm)                 # normalized A^2, breaks hop chain
    w1 = params["w1"].astype(jnp.bfloat16)
    wo1 = params["wo1"].astype(jnp.bfloat16)
    wo2 = jnp.zeros((HID, LANE), jnp.float32).at[:, :NCLS].set(params["wo2"])
    bo2 = jnp.full((1, LANE), -1e30, jnp.float32).at[:, :NCLS].set(params["bo2"])

    args = (adj_norm, adj2, x,
            params["w0"], params["b0"], w1, params["b1"],
            wo1, params["bo1"], wo2, bo2)

    def full_spec(a):
        nd = a.ndim
        return pl.BlockSpec(a.shape, lambda b, _nd=nd: (0,) * _nd)

    in_specs = [
        pl.BlockSpec((1, N, N), lambda b: (b, 0, 0)),     # adj
        pl.BlockSpec((1, N, N), lambda b: (b, 0, 0)),     # adj^2
        pl.BlockSpec((1, N, F), lambda b: (b, 0, 0)),     # x
        full_spec(params["w0"]), full_spec(params["b0"]),
        full_spec(w1), full_spec(params["b1"]),
        full_spec(wo1), full_spec(params["bo1"]),
        full_spec(wo2), full_spec(bo2),
    ]

    out = pl.pallas_call(
        gnn_kernel,
        out_shape=jax.ShapeDtypeStruct((B, 1, LANE), jnp.float32),
        grid=(B,),
        in_specs=in_specs,
        out_specs=pl.BlockSpec((1, 1, LANE), lambda b: (b, 0, 0)),
        compiler_params=pltpu.CompilerParams(dimension_semantics=("parallel",)),
    )(*args)
    return out[:, 0, :NCLS]                               # [B, 3] log-probabilities


def init_params(key):
    ks = jax.random.split(key, 8)

    def lin(kw, fan_in, fan_out):
        scale = 1.0 / jnp.sqrt(jnp.float32(fan_in))
        return jax.random.normal(kw, (fan_in, fan_out), jnp.float32) * scale

    return {
        "w0":  lin(ks[0], (K + 1) * F,   DIM),
        "b0":  jax.random.normal(ks[1], (1, DIM),  jnp.float32) * 0.01,
        "w1":  lin(ks[2], (K + 1) * DIM, DIM),
        "b1":  jax.random.normal(ks[3], (1, DIM),  jnp.float32) * 0.01,
        "wo1": lin(ks[4], DIM, HID),
        "bo1": jax.random.normal(ks[5], (1, HID),  jnp.float32) * 0.01,
        "wo2": lin(ks[6], HID, NCLS),
        "bo2": jax.random.normal(ks[7], (1, NCLS), jnp.float32) * 0.01,
    }


def build_normalized_adjacency(key):
    # Deterministic synthetic undirected graph: ring + a few random symmetric edges.
    a = jnp.zeros((N, N), jnp.float32)
    idx = jnp.arange(N)
    a = a.at[idx, (idx + 1) % N].set(1.0)
    a = a.at[(idx + 1) % N, idx].set(1.0)
    extra = (jax.random.uniform(key, (N, N)) < 0.15).astype(jnp.float32)
    extra = jnp.triu(extra, k=2)
    a = jnp.clip(a + extra + extra.T, 0.0, 1.0)
    a = a * (1.0 - jnp.eye(N, dtype=jnp.float32))   # no self-loops (DGL TAGConv default)
    deg = jnp.sum(a, axis=1)
    dinv = jnp.where(deg > 0, 1.0 / jnp.sqrt(deg), 0.0)
    return a * dinv[:, None] * dinv[None, :]        # D^{-1/2} A D^{-1/2}


if __name__ == "__main__":
    key = jax.random.PRNGKey(0)
    k_graph, k_feat, k_params = jax.random.split(key, 3)

    B = 2                                                  # small batch of graphs
    gkeys = jax.random.split(k_graph, B)
    adj_norm = jnp.stack([build_normalized_adjacency(k) for k in gkeys])   # [2, 16, 16]
    x = jax.random.normal(k_feat, (B, N, F), jnp.float32)                  # [2, 16, 8]
    params = init_params(k_params)

    out = jax.jit(gnn_forward)(adj_norm, x, params)
    jax.block_until_ready(out)

    assert out.shape == (B, NCLS) and out.dtype == jnp.float32
    # log-softmax sanity: probabilities of each graph sum to ~1
    probs = jnp.sum(jnp.exp(out), axis=1)
    assert bool(jnp.all(jnp.abs(probs - 1.0) < 1e-3))
    print("KERNEL_OK")
</pallas_src>

<mosaic_0001>
module attributes {stable_mosaic.version = 11 : i64} {
  func.func @gnn_kernel(%arg0: i32, %arg1: memref<1x16x16xf32, #tpu.memory_space<vmem>>, %arg2: memref<1x16x16xf32, #tpu.memory_space<vmem>>, %arg3: memref<1x16x8xf32, #tpu.memory_space<vmem>>, %arg4: memref<24x128xf32, #tpu.memory_space<vmem>>, %arg5: memref<1x128xf32, #tpu.memory_space<vmem>>, %arg6: memref<384x128xbf16, #tpu.memory_space<vmem>>, %arg7: memref<1x128xf32, #tpu.memory_space<vmem>>, %arg8: memref<128x256xbf16, #tpu.memory_space<vmem>>, %arg9: memref<1x256xf32, #tpu.memory_space<vmem>>, %arg10: memref<256x128xf32, #tpu.memory_space<vmem>>, %arg11: memref<1x128xf32, #tpu.memory_space<vmem>>, %arg12: memref<1x1x128xf32, #tpu.memory_space<vmem>>) attributes {dimension_semantics = [#tpu.dimension_semantics<parallel>], iteration_bounds = array<i64: 2>, scalar_prefetch = 0 : i64, scratch_operands = 0 : i64, tpu.core_type = #tpu.core_type<tc>, window_params = [{transform_indices = @transform_0, window_bounds = array<i64: 1, 16, 16>}, {transform_indices = @transform_1, window_bounds = array<i64: 1, 16, 16>}, {transform_indices = @transform_2, window_bounds = array<i64: 1, 16, 8>}, {pipeline_mode = #tpu.pipeline_mode<synchronous>, transform_indices = @transform_3, window_bounds = array<i64: 24, 128>}, {pipeline_mode = #tpu.pipeline_mode<synchronous>, transform_indices = @transform_4, window_bounds = array<i64: 1, 128>}, {pipeline_mode = #tpu.pipeline_mode<synchronous>, transform_indices = @transform_5, window_bounds = array<i64: 384, 128>}, {pipeline_mode = #tpu.pipeline_mode<synchronous>, transform_indices = @transform_6, window_bounds = array<i64: 1, 128>}, {pipeline_mode = #tpu.pipeline_mode<synchronous>, transform_indices = @transform_7, window_bounds = array<i64: 128, 256>}, {pipeline_mode = #tpu.pipeline_mode<synchronous>, transform_indices = @transform_8, window_bounds = array<i64: 1, 256>}, {pipeline_mode = #tpu.pipeline_mode<synchronous>, transform_indices = @transform_9, window_bounds = array<i64: 256, 128>}, {pipeline_mode = #tpu.pipeline_mode<synchronous>, transform_indices = @transform_10, window_bounds = array<i64: 1, 128>}, {transform_indices = @transform_11, window_bounds = array<i64: 1, 1, 128>}]} {
    %c0 = arith.constant 0 : index
    %c0_0 = arith.constant 0 : index
    %c0_1 = arith.constant 0 : index
    %0 = vector.load %arg1[%c0, %c0_0, %c0_1] : memref<1x16x16xf32, #tpu.memory_space<vmem>>, vector<1x16x16xf32>
    %1 = vector.shape_cast %0 : vector<1x16x16xf32> to vector<16x16xf32>
    %c0_2 = arith.constant 0 : index
    %c0_3 = arith.constant 0 : index
    %c0_4 = arith.constant 0 : index
    %2 = vector.load %arg2[%c0_2, %c0_3, %c0_4] : memref<1x16x16xf32, #tpu.memory_space<vmem>>, vector<1x16x16xf32>
    %3 = vector.shape_cast %2 : vector<1x16x16xf32> to vector<16x16xf32>
    %c0_5 = arith.constant 0 : index
    %c0_6 = arith.constant 0 : index
    %c0_7 = arith.constant 0 : index
    %4 = vector.load %arg3[%c0_5, %c0_6, %c0_7] : memref<1x16x8xf32, #tpu.memory_space<vmem>>, vector<1x16x8xf32>
    %5 = vector.shape_cast %4 : vector<1x16x8xf32> to vector<16x8xf32>
    %c0_8 = arith.constant 0 : index
    %c0_9 = arith.constant 0 : index
    %6 = vector.load %arg4[%c0_8, %c0_9] : memref<24x128xf32, #tpu.memory_space<vmem>>, vector<24x128xf32>
    %cst = arith.constant dense<0.000000e+00> : vector<16x8xf32>
    %7 = tpu.matmul %1, %5, %cst {dimension_numbers = #tpu.dot_dimension_numbers<[1], [0], [0], [1], [0, 0, 1, 1], [], []>} : vector<16x16xf32>, vector<16x8xf32>, vector<16x8xf32> -> vector<16x8xf32>
    %cst_10 = arith.constant dense<0.000000e+00> : vector<16x8xf32>
    %8 = tpu.matmul %3, %5, %cst_10 {dimension_numbers = #tpu.dot_dimension_numbers<[1], [0], [0], [1], [0, 0, 1, 1], [], []>} : vector<16x16xf32>, vector<16x8xf32>, vector<16x8xf32> -> vector<16x8xf32>
    %9 = vector.extract_strided_slice %6 {offsets = [0, 0], sizes = [8, 128], strides = [1, 1]} : vector<24x128xf32> to vector<8x128xf32>
    %cst_11 = arith.constant dense<0.000000e+00> : vector<16x128xf32>
    %10 = tpu.matmul %5, %9, %cst_11 {dimension_numbers = #tpu.dot_dimension_numbers<[1], [0], [0], [1], [0, 0, 1, 1], [], []>} : vector<16x8xf32>, vector<8x128xf32>, vector<16x128xf32> -> vector<16x128xf32>
    %11 = vector.extract_strided_slice %6 {offsets = [8, 0], sizes = [8, 128], strides = [1, 1]} : vector<24x128xf32> to vector<8x128xf32>
    %cst_12 = arith.constant dense<0.000000e+00> : vector<16x128xf32>
    %12 = tpu.matmul %7, %11, %cst_12 {dimension_numbers = #tpu.dot_dimension_numbers<[1], [0], [0], [1], [0, 0, 1, 1], [], []>} : vector<16x8xf32>, vector<8x128xf32>, vector<16x128xf32> -> vector<16x128xf32>
    %13 = arith.addf %10, %12 : vector<16x128xf32>
    %14 = vector.extract_strided_slice %6 {offsets = [16, 0], sizes = [8, 128], strides = [1, 1]} : vector<24x128xf32> to vector<8x128xf32>
    %cst_13 = arith.constant dense<0.000000e+00> : vector<16x128xf32>
    %15 = tpu.matmul %8, %14, %cst_13 {dimension_numbers = #tpu.dot_dimension_numbers<[1], [0], [0], [1], [0, 0, 1, 1], [], []>} : vector<16x8xf32>, vector<8x128xf32>, vector<16x128xf32> -> vector<16x128xf32>
    %16 = arith.addf %13, %15 : vector<16x128xf32>
    %c0_14 = arith.constant 0 : index
    %c0_15 = arith.constant 0 : index
    %17 = vector.load %arg5[%c0_14, %c0_15] : memref<1x128xf32, #tpu.memory_space<vmem>>, vector<1x128xf32>
    %18 = vector.broadcast %17 : vector<1x128xf32> to vector<16x128xf32>
    %19 = arith.addf %16, %18 : vector<16x128xf32>
    %cst_16 = arith.constant 0.000000e+00 : f32
    %20 = vector.broadcast %cst_16 : f32 to vector<16x128xf32>
    %21 = arith.maximumf %19, %20 : vector<16x128xf32>
    %c0_17 = arith.constant 0 : index
    %c0_18 = arith.constant 0 : index
    %22 = vector.load %arg6[%c0_17, %c0_18] : memref<384x128xbf16, #tpu.memory_space<vmem>>, vector<384x128xbf16>
    %cst_19 = arith.constant dense<0.000000e+00> : vector<16x128xf32>
    %23 = tpu.matmul %1, %21, %cst_19 {dimension_numbers = #tpu.dot_dimension_numbers<[1], [0], [0], [1], [0, 0, 1, 1], [], []>} : vector<16x16xf32>, vector<16x128xf32>, vector<16x128xf32> -> vector<16x128xf32>
    %cst_20 = arith.constant dense<0.000000e+00> : vector<16x128xf32>
    %24 = tpu.matmul %3, %21, %cst_20 {dimension_numbers = #tpu.dot_dimension_numbers<[1], [0], [0], [1], [0, 0, 1, 1], [], []>} : vector<16x16xf32>, vector<16x128xf32>, vector<16x128xf32> -> vector<16x128xf32>
    %25 = arith.truncf %21 : vector<16x128xf32> to vector<16x128xbf16>
    %26 = arith.truncf %23 : vector<16x128xf32> to vector<16x128xbf16>
    %27 = arith.truncf %24 : vector<16x128xf32> to vector<16x128xbf16>
    %28 = vector.extract_strided_slice %22 {offsets = [0, 0], sizes = [128, 128], strides = [1, 1]} : vector<384x128xbf16> to vector<128x128xbf16>
    %cst_21 = arith.constant dense<0.000000e+00> : vector<16x128xf32>
    %29 = tpu.matmul %25, %28, %cst_21 {dimension_numbers = #tpu.dot_dimension_numbers<[1], [0], [0], [1], [0, 0, 1, 1], [], []>} : vector<16x128xbf16>, vector<128x128xbf16>, vector<16x128xf32> -> vector<16x128xf32>
    %30 = vector.extract_strided_slice %22 {offsets = [128, 0], sizes = [128, 128], strides = [1, 1]} : vector<384x128xbf16> to vector<128x128xbf16>
    %cst_22 = arith.constant dense<0.000000e+00> : vector<16x128xf32>
    %31 = tpu.matmul %26, %30, %cst_22 {dimension_numbers = #tpu.dot_dimension_numbers<[1], [0], [0], [1], [0, 0, 1, 1], [], []>} : vector<16x128xbf16>, vector<128x128xbf16>, vector<16x128xf32> -> vector<16x128xf32>
    %32 = arith.addf %29, %31 : vector<16x128xf32>
    %33 = vector.extract_strided_slice %22 {offsets = [256, 0], sizes = [128, 128], strides = [1, 1]} : vector<384x128xbf16> to vector<128x128xbf16>
    %cst_23 = arith.constant dense<0.000000e+00> : vector<16x128xf32>
    %34 = tpu.matmul %27, %33, %cst_23 {dimension_numbers = #tpu.dot_dimension_numbers<[1], [0], [0], [1], [0, 0, 1, 1], [], []>} : vector<16x128xbf16>, vector<128x128xbf16>, vector<16x128xf32> -> vector<16x128xf32>
    %35 = arith.addf %32, %34 : vector<16x128xf32>
    %c0_24 = arith.constant 0 : index
    %c0_25 = arith.constant 0 : index
    %36 = vector.load %arg7[%c0_24, %c0_25] : memref<1x128xf32, #tpu.memory_space<vmem>>, vector<1x128xf32>
    %37 = vector.broadcast %36 : vector<1x128xf32> to vector<16x128xf32>
    %38 = arith.addf %35, %37 : vector<16x128xf32>
    %39 = arith.mulf %38, %38 : vector<16x128xf32>
    %cst_26 = arith.constant dense<0.000000e+00> : vector<16xf32>
    %40 = vector.multi_reduction <add>, %39, %cst_26 [1] : vector<16x128xf32> to vector<16xf32>
    %41 = vector.shape_cast %40 : vector<16xf32> to vector<16x1xf32>
    %42 = math.sqrt %41 : vector<16x1xf32>
    %cst_27 = arith.constant dense<0.000000e+00> : vector<1xf32>
    %43 = vector.multi_reduction <add>, %42, %cst_27 [0] : vector<16x1xf32> to vector<1xf32>
    %44 = vector.shape_cast %43 : vector<1xf32> to vector<1x1xf32>
    %cst_28 = arith.constant 6.250000e-02 : f32
    %45 = vector.broadcast %cst_28 : f32 to vector<1x1xf32>
    %46 = arith.mulf %44, %45 : vector<1x1xf32>
    %cst_29 = arith.constant 1.280000e+02 : f32
    %47 = math.sqrt %cst_29 : f32
    %cst_30 = arith.constant 9.99999996E-13 : f32
    %48 = vector.broadcast %cst_30 : f32 to vector<1x1xf32>
    %49 = arith.addf %46, %48 : vector<1x1xf32>
    %50 = tpu.reciprocal %49 {approx = true} : vector<1x1xf32> -> vector<1x1xf32>
    %51 = vector.broadcast %47 : f32 to vector<1x1xf32>
    %52 = arith.mulf %51, %50 : vector<1x1xf32>
    %cst_31 = arith.constant dense<0xFF800000> : vector<128xf32>
    %53 = vector.multi_reduction <maximumf>, %38, %cst_31 [0] : vector<16x128xf32> to vector<128xf32>
    %54 = vector.shape_cast %53 : vector<128xf32> to vector<1x128xf32>
    %55 = vector.broadcast %52 : vector<1x1xf32> to vector<1x128xf32>
    %56 = arith.mulf %54, %55 : vector<1x128xf32>
    %57 = arith.truncf %56 : vector<1x128xf32> to vector<1x128xbf16>
    %c0_32 = arith.constant 0 : index
    %c0_33 = arith.constant 0 : index
    %58 = vector.load %arg8[%c0_32, %c0_33] : memref<128x256xbf16, #tpu.memory_space<vmem>>, vector<128x256xbf16>
    %cst_34 = arith.constant dense<0.000000e+00> : vector<1x256xf32>
    %59 = tpu.matmul %57, %58, %cst_34 {dimension_numbers = #tpu.dot_dimension_numbers<[1], [0], [0], [1], [0, 0, 1, 1], [], []>} : vector<1x128xbf16>, vector<128x256xbf16>, vector<1x256xf32> -> vector<1x256xf32>
    %c0_35 = arith.constant 0 : index
    %c0_36 = arith.constant 0 : index
    %60 = vector.load %arg9[%c0_35, %c0_36] : memref<1x256xf32, #tpu.memory_space<vmem>>, vector<1x256xf32>
    %61 = arith.addf %59, %60 : vector<1x256xf32>
    %cst_37 = arith.constant 0.000000e+00 : f32
    %62 = vector.broadcast %cst_37 : f32 to vector<1x256xf32>
    %63 = arith.cmpf ogt, %61, %62 : vector<1x256xf32>
    %cst_38 = arith.constant 0.00999999977 : f32
    %64 = vector.broadcast %cst_38 : f32 to vector<1x256xf32>
    %65 = arith.mulf %64, %61 : vector<1x256xf32>
    %66 = arith.select %63, %61, %65 : vector<1x256xi1>, vector<1x256xf32>
    %c0_39 = arith.constant 0 : index
    %c0_40 = arith.constant 0 : index
    %67 = vector.load %arg10[%c0_39, %c0_40] : memref<256x128xf32, #tpu.memory_space<vmem>>, vector<256x128xf32>
    %cst_41 = arith.constant dense<0.000000e+00> : vector<1x128xf32>
    %68 = tpu.matmul %66, %67, %cst_41 {dimension_numbers = #tpu.dot_dimension_numbers<[1], [0], [0], [1], [0, 0, 1, 1], [], []>} : vector<1x256xf32>, vector<256x128xf32>, vector<1x128xf32> -> vector<1x128xf32>
    %c0_42 = arith.constant 0 : index
    %c0_43 = arith.constant 0 : index
    %69 = vector.load %arg11[%c0_42, %c0_43] : memref<1x128xf32, #tpu.memory_space<vmem>>, vector<1x128xf32>
    %70 = arith.addf %68, %69 : vector<1x128xf32>
    %cst_44 = arith.constant dense<0xFF800000> : vector<1xf32>
    %71 = vector.multi_reduction <maximumf>, %70, %cst_44 [1] : vector<1x128xf32> to vector<1xf32>
    %72 = vector.shape_cast %71 : vector<1xf32> to vector<1x1xf32>
    %73 = vector.broadcast %72 : vector<1x1xf32> to vector<1x128xf32>
    %74 = arith.subf %70, %73 : vector<1x128xf32>
    %75 = math.exp %74 : vector<1x128xf32>
    %cst_45 = arith.constant dense<0.000000e+00> : vector<1xf32>
    %76 = vector.multi_reduction <add>, %75, %cst_45 [1] : vector<1x128xf32> to vector<1xf32>
    %77 = vector.shape_cast %76 : vector<1xf32> to vector<1x1xf32>
    %78 = math.log %77 : vector<1x1xf32>
    %79 = vector.broadcast %78 : vector<1x1xf32> to vector<1x128xf32>
    %80 = arith.subf %74, %79 : vector<1x128xf32>
    %c0_46 = arith.constant 0 : index
    %c0_47 = arith.constant 0 : index
    %c0_48 = arith.constant 0 : index
    %81 = vector.load %arg12[%c0_46, %c0_47, %c0_48] : memref<1x1x128xf32, #tpu.memory_space<vmem>>, vector<1x1x128xf32>
    %82 = vector.shape_cast %81 : vector<1x1x128xf32> to vector<1x128xf32>
    %83 = vector.shape_cast %80 : vector<1x128xf32> to vector<1x1x128xf32>
    tpu.vector_store %arg12[%c0_46, %c0_47, %c0_48], %83 {strides = array<i32>} : memref<1x1x128xf32, #tpu.memory_space<vmem>>, vector<1x1x128xf32>,
    return
  }
  func.func @transform_0(%arg0: i32) -> (i32, i32, i32) {
    %c0_i32 = arith.constant 0 : i32
    %c0_i32_0 = arith.constant 0 : i32
    %c0_i32_1 = arith.constant 0 : i32
    return %arg0, %c0_i32, %c0_i32_0 : i32, i32, i32
  }
  func.func @transform_1(%arg0: i32) -> (i32, i32, i32) {
    %c0_i32 = arith.constant 0 : i32
    %c0_i32_0 = arith.constant 0 : i32
    %c0_i32_1 = arith.constant 0 : i32
    return %arg0, %c0_i32, %c0_i32_0 : i32, i32, i32
  }
  func.func @transform_2(%arg0: i32) -> (i32, i32, i32) {
    %c0_i32 = arith.constant 0 : i32
    %c0_i32_0 = arith.constant 0 : i32
    %c0_i32_1 = arith.constant 0 : i32
    return %arg0, %c0_i32, %c0_i32_0 : i32, i32, i32
  }
  func.func @transform_3(%arg0: i32) -> (i32, i32) {
    %c0_i32 = arith.constant 0 : i32
    %c0_i32_0 = arith.constant 0 : i32
    %c0_i32_1 = arith.constant 0 : i32
    return %c0_i32, %c0_i32_0 : i32, i32
  }
  func.func @transform_4(%arg0: i32) -> (i32, i32) {
    %c0_i32 = arith.constant 0 : i32
    %c0_i32_0 = arith.constant 0 : i32
    %c0_i32_1 = arith.constant 0 : i32
    return %c0_i32, %c0_i32_0 : i32, i32
  }
  func.func @transform_5(%arg0: i32) -> (i32, i32) {
    %c0_i32 = arith.constant 0 : i32
    %c0_i32_0 = arith.constant 0 : i32
    %c0_i32_1 = arith.constant 0 : i32
    return %c0_i32, %c0_i32_0 : i32, i32
  }
  func.func @transform_6(%arg0: i32) -> (i32, i32) {
    %c0_i32 = arith.constant 0 : i32
    %c0_i32_0 = arith.constant 0 : i32
    %c0_i32_1 = arith.constant 0 : i32
    return %c0_i32, %c0_i32_0 : i32, i32
  }
  func.func @transform_7(%arg0: i32) -> (i32, i32) {
    %c0_i32 = arith.constant 0 : i32
    %c0_i32_0 = arith.constant 0 : i32
    %c0_i32_1 = arith.constant 0 : i32
    return %c0_i32, %c0_i32_0 : i32, i32
  }
  func.func @transform_8(%arg0: i32) -> (i32, i32) {
    %c0_i32 = arith.constant 0 : i32
    %c0_i32_0 = arith.constant 0 : i32
    %c0_i32_1 = arith.constant 0 : i32
    return %c0_i32, %c0_i32_0 : i32, i32
  }
  func.func @transform_9(%arg0: i32) -> (i32, i32) {
    %c0_i32 = arith.constant 0 : i32
    %c0_i32_0 = arith.constant 0 : i32
    %c0_i32_1 = arith.constant 0 : i32
    return %c0_i32, %c0_i32_0 : i32, i32
  }
  func.func @transform_10(%arg0: i32) -> (i32, i32) {
    %c0_i32 = arith.constant 0 : i32
    %c0_i32_0 = arith.constant 0 : i32
    %c0_i32_1 = arith.constant 0 : i32
    return %c0_i32, %c0_i32_0 : i32, i32
  }
  func.func @transform_11(%arg0: i32) -> (i32, i32, i32) {
    %c0_i32 = arith.constant 0 : i32
    %c0_i32_0 = arith.constant 0 : i32
    %c0_i32_1 = arith.constant 0 : i32
    return %arg0, %c0_i32, %c0_i32_0 : i32, i32, i32
  }
}

</mosaic_0001>

<bundles_post_ra>
// kernel: gnn_forward.1
= control target key start
LH: loop header
LB: loop body
LE: loop exit
PB: predicated region body
PF: predicated region fallthrough
CT: control target
= control target key end

     0   :  { %16 = vsyncpa [#allocation3], 0  ;;  %s2676_s0 = inlined_call_operand.vmem [shape: f32[2,16,16], index: 0, kind: input, shape index: {}]   ;;  %s2677_s1 = inlined_call_operand.vmem [shape: f32[2,16,16], index: 1, kind: input, shape index: {}]   ;;  %s2678_s2 = inlined_call_operand.vmem [shape: f32[2,16,8], index: 2, kind: input, shape index: {}]   ;;  %s2679_s3 = inlined_call_operand.vmem [shape: f32[24,128], index: 3, kind: input, shape index: {}]   ;;  %s2680_s4 = inlined_call_operand.vmem [shape: f32[1,128], index: 4, kind: input, shape index: {}]   ;;  %s2681_s5 = inlined_call_operand.vmem [shape: bf16[384,128], index: 5, kind: input, shape index: {}]   ;;  %s2682_s6 = inlined_call_operand.vmem [shape: f32[1,128], index: 6, kind: input, shape index: {}]   ;;  %s2683_s7 = inlined_call_operand.vmem [shape: bf16[128,256], index: 7, kind: input, shape index: {}]   ;;  %s2684_s8 = inlined_call_operand.vmem [shape: f32[1,256], index: 8, kind: input, shape index: {}]   ;;  %s2685_s9 = inlined_call_operand.vmem [shape: f32[256,128], index: 9, kind: input, shape index: {}]   ;;  %s2686_s10 = inlined_call_operand.vmem [shape: f32[1,128], index: 10, kind: input, shape index: {}]   ;;  %s2687_s11 = inlined_call_operand.hbm [shape: f32[2,1,128], index: 11, kind: output, shape index: {}]  }
   0x1   :  { %18 = vsyncpa [#allocation3 + $0x1], 0  ;;  %s2279_s17 = smov 0   ;;  %s2281_s18 = smov 0  }
   0x2   :  { %s2283_s19 = smov 0   ;;  %s2285_s20 = smov 0  }
   0x3 LB: > { %s2300_s21 = sadd.s32 4294967295, %s2213_s20   ;;  %s1737_s22 = sadd.s32 4294967294, %s2213_s20   ;;  %s2213_s20 = sphi %s2285_s20, %s2695_s20   ;;  %s2209_s19 = sphi %s2283_s19, %s2694_s19   ;;  %s2205_s18 = sphi %s2281_s18, %s2693_s18   ;;  %s2201_s17 = sphi %s2279_s17, %s2692_s17  }
   0x4   : > { %s2304_s23 = sadd.s32 1, %s2213_s20   ;;  %s277_s24 = sadd.s32 1, %s2209_s19 }
   0x5   : > { %s274_s25 = ssub.s32 %s2213_s20, %s2304_s23  ;;  %p287_p0 = scmp.ne.s32.totalorder %s2209_s19, %s2205_s18 }
   0x6   : > { %p275_p1 = scmp.eq.s32.totalorder %s274_s25, 0  ;;  %p288_p2 = scmp.eq.s32.totalorder %s2300_s21, 1 }
   0x7   : > { %p293_p3 = scmp.ne.s32.totalorder %s2205_s18, %s2201_s17  ;;  %p294_p4 = scmp.eq.s32.totalorder %s1737_s22, 1 }
   0x8   : > { %s2315_s26 = scalar_select %p275_p1, %s2209_s19, %s277_s24  }
   0x9   : > { %p2317_p5 = por %p288_p2, %p287_p0  ;;  %p2321_p6 = por %p294_p4, %p293_p3 }
   0xa   : > { %2688 = sst [smem:[#allocation5_spill]] %s2315_s26  ;;  %p1740_p7 = scmp.ge.s32.totalorder %s2213_s20, 1 }
   0xb   : > { %p360_p8 = scmp.lt.s32.totalorder %s2213_s20, 3 }
   0xd   : > { %p361_p9 = pnand %p1740_p7, %p360_p8 }
   0xe   : > { %p409_p10 = scmp.lt.s32.totalorder (!%p361_p9), %s2300_s21, 1  ;;  %vm434_vm0 = vcmask (!%p361_p9), 130048   ;;  %v432_v6 = vld [vmem:[%s2679_s3 + $0x8] sm:$0xff] (!%p361_p9)  ;;  %v431_v8 = vld [vmem:[%s2679_s3] sm:$0xff] (!%p361_p9)  ;;  %vm597_vm1 = vcmask (!%p361_p9), 64512   ;;  %v433_v11 = vld [vmem:[%s2679_s3 + $0x10] sm:$0xff] (!%p361_p9) }
   0xf   : > { %364 = sbr.rel (%p361_p9) target bundleno = 1913 (0x779), region = 64  ;;  %v2215_v14 = vmov (!%p361_p9), 0.0   ;;  %vm2216_vm2 = vmmov (!%p361_p9), 0   ;;  %v2101_v15 = vld [vmem:[%s2681_s5 + $0x40] sm:$0xff] (!%p361_p9)   ;;  %v2102_v16 = vld [vmem:[%s2681_s5 + $0x48] sm:$0xff] (!%p361_p9)   ;;  %v2103_v17 = vld [vmem:[%s2681_s5 + $0x50] sm:$0xff] (!%p361_p9)  }
  0x10   : > { %1939 = vmatprep.subr.bf16.mxu1 (!%p361_p9), %v2215_v14  ;;  %1955 = vmatprep.mubr.msk.bf16.mxu1 (!%p361_p9), %vm2216_vm2, %v2215_v14  ;;  %v2104_v18 = vld [vmem:[%s2681_s5 + $0x58] sm:$0xff] (!%p361_p9)   ;;  %v2105_v19 = vld [vmem:[%s2681_s5 + $0x60] sm:$0xff] (!%p361_p9)   ;;  %v2106_v20 = vld [vmem:[%s2681_s5 + $0x68] sm:$0xff] (!%p361_p9)   ;;  %vm1631_vm9 = vcmask (!%p361_p9), 1040384  }
  0x11   : > { %1940 = vmatpush3.bf16.msra.mxu1 (!%p361_p9), %v2101_v15  ;;  %v2107_v21 = vld [vmem:[%s2681_s5 + $0x70] sm:$0xff] (!%p361_p9)   ;;  %v1757_v22 = vld [vmem:[%s2680_s4] ss:$0 sm:$0xff] (!%p361_p9)  ;;  %v2094_v31 = vld [vmem:[%s2681_s5 + $0x8] sm:$0xff] (!%p361_p9)  }
  0x12   : > { %1941 = vmatprep.subr.bf16.mxu1 (!%p361_p9), %v2215_v14  ;;  %v2093_v30 = vld [vmem:[%s2681_s5] sm:$0xff] (!%p361_p9)   ;;  %v2095_v32 = vld [vmem:[%s2681_s5 + $0x10] sm:$0xff] (!%p361_p9)   ;;  %v2096_v33 = vld [vmem:[%s2681_s5 + $0x18] sm:$0xff] (!%p361_p9)  }
  0x13   : > { %v2097_v34 = vld [vmem:[%s2681_s5 + $0x20] sm:$0xff] (!%p361_p9)   ;;  %v2098_v35 = vld [vmem:[%s2681_s5 + $0x28] sm:$0xff] (!%p361_p9)   ;;  %v2099_v36 = vld [vmem:[%s2681_s5 + $0x30] sm:$0xff] (!%p361_p9)  }
  0x14   : > { %v2100_v37 = vld [vmem:[%s2681_s5 + $0x38] sm:$0xff] (!%p361_p9)   ;;  %v2109_v41 = vld [vmem:[%s2681_s5 + $0x80] sm:$0xff] (!%p361_p9)   ;;  %v2110_v44 = vld [vmem:[%s2681_s5 + $0x88] sm:$0xff] (!%p361_p9)  }
  0x15   : > { %1942 = vmatpush3.bf16.msra.mxu1 (!%p361_p9), %v2102_v16  ;;  %v2108_v38 = vld [vmem:[%s2681_s5 + $0x78] sm:$0xff] (!%p361_p9)   ;;  %v2111_v47 = vld [vmem:[%s2681_s5 + $0x90] sm:$0xff] (!%p361_p9)   ;;  %v2113_v49 = vld [vmem:[%s2681_s5 + $0xa0] sm:$0xff] (!%p361_p9)  }
  0x16   : > { %s410_s29 = scalar_select %p409_p10, %s2300_s21, 1  ;;  %1943 = vmatprep.subr.bf16.mxu1 %v2215_v14  ;;  %v2112_v48 = vld [vmem:[%s2681_s5 + $0x98] sm:$0xff]   ;;  %v2114_v50 = vld [vmem:[%s2681_s5 + $0xa8] sm:$0xff]   ;;  %v2115_v51 = vld [vmem:[%s2681_s5 + $0xb0] sm:$0xff]  }
  0x17   : > { %v2116_v52 = vld [vmem:[%s2681_s5 + $0xb8] sm:$0xff]   ;;  %v2123_v15 = vld [vmem:[%s2683_s7 + $0x20] ss:$8 sps:$4 sm:$0xff]   ;;  %v2125_v16 = vld [vmem:[%s2683_s7 + $0x24] ss:$8 sps:$4 sm:$0xff]  }
  0x18   : > { %s1806_s30 = sshll.u32 %s410_s29, 4 }
  0x19   : > { %s423_s14 = scalar_lea.vmem %s2678_s2, %s1806_s30  ;;  %s413_s22 = scalar_lea.vmem %s2676_s0, %s1806_s30  ;;  %1944 = vmatpush3.bf16.msra.mxu1 %v2103_v17  ;;  %v2128_v17 = vld [vmem:[%s2683_s7 + $0x34] ss:$8 sps:$4 sm:$0xff]  }
  0x1a   : > { %v429_v0 = vld [vmem:[%s423_s14] sm:$0xff]  ;;  %v430_v1 = vld [vmem:[%s423_s14 + $0x8] sm:$0xff]  ;;  %s418_s26 = scalar_lea.vmem %s2677_s1, %s1806_s30  ;;  %1945 = vmatprep.subr.bf16.mxu1 %v2215_v14  ;;  %s1803_s14 = sshll.u32 %s2300_s21, 4 }
  0x1b   : > { %v425_v2 = vld [vmem:[%s413_s22] sm:$0xff]  ;;  %v1999_v3 = vpack.c.bf16 %v430_v1, %v429_v0  ;;  %v2339_v4 = vld [vmem:[%s413_s22 + $0x8] sm:$0xff]  ;;  %s2634_s25 = scalar_lea.hbm %s2687_s11, %s1803_s14  ;;  %s2218_s21 = smov [#allocation2]  }
  0x1c   : > { %1900 = vmatprep.mubr.msk.f32.mxu0 %vm434_vm0, %v425_v2  ;;  %v2341_v5 = vld [vmem:[%s418_s26] sm:$0xff]  ;;  %v2346_v7 = vld [vmem:[%s418_s26 + $0x8] sm:$0xff]  ;;  %s407_s26 = sand.u32 1, %s2205_s18   ;;  %s2155_s30 = sshll.u32 %s2218_s21, 4  ;;  %s2156_s30 = int_to_ptr.vmem [resolvable:$false] %s2155_s30 }
  0x1d   : > { %2000 = vmatprep.subr.bf16.mxu0 %v1999_v3  ;;  %1946 = vmatpush3.bf16.msra.mxu1 %v2104_v18  ;;  %v2126_v18 = vld [vmem:[%s2683_s7 + $0x30] ss:$8 sps:$4 sm:$0xff]   ;;  %s408_s15 = scalar_lea.vmem [#allocation2], %s407_s26  ;;  %s1646_s29 = scalar_lea.sflag [#allocation3], %s407_s26 }
  0x1e   : > { %2002 = vmatpush3.bf16.msra.mxu0 %v1999_v3  ;;  %1947 = vmatprep.subr.bf16.mxu1 %v2215_v14  ;;  %s1658_s16 = sshll.u32 %s408_s15, 4  ;;  %s2157_s13 = scalar_lea.vmem %s2156_s30, 32  ;;  %s2636_s16 = int_to_ptr.vmem [resolvable:$true] %s1658_s16 }
  0x1f   : > { %2004 = vmatprep.subr.bf16.mxu0 %v1999_v3  ;;  %s2151_s12 = scalar_lea.vmem %s2636_s16, 16  ;;  %p2158_p0 = scmp.lt.s32.totalorder %s2636_s16, %s2156_s30 }
  0x20   : > { %p2152_p11 = scmp.ne.s32.totalorder %s2636_s16, %s2151_s12  ;;  %p2159_p1 = scmp.lt.s32.totalorder %s2157_s13, %s2151_s12 }
  0x21   : > { %1901 = vmatmul.mubr.msk.f32.vlgmr.msra.gmra.mrb[0].mxu0 %vm434_vm0, %v2339_v4  ;;  %1948 = vmatpush3.bf16.msra.mxu1 %v2105_v19  ;;  %v2131_v19 = vld [vmem:[%s2683_s7 + $0x44] ss:$8 sps:$4 sm:$0xff]  }
  0x22   : > { %2006 = vmatpush3.bf16.msra.mxu0 %v1999_v3  ;;  %1907 = vmatprep.mubr.msk.f32.mxu0 %vm434_vm0, %v2341_v5  ;;  %p2153_p12 = pnand %p2152_p11, %p2317_p5  ;;  %p2160_p2 = por %p2159_p1, %p2158_p0 }
  0x23   : > { %1910 = vmatprep.subr.mxu0 %v432_v6  ;;  %1949 = vmatprep.subr.bf16.mxu1 %v2215_v14 }
  0x24   : > { %p2154_p13 = pneg %p2153_p12 }
  0x25   : > { %1908 = vmatmul.mubr.msk.f32.vlgmr.msra.gmra.mrb[2].mxu0 %vm434_vm0, %v2346_v7  ;;  %1950 = vmatpush3.bf16.msra.mxu1 %v2106_v20  ;;  %v2217_v20 = vmov 0  }
  0x26   : > { %1911 = vmatpush3.msra.mxu0 %v432_v6  ;;  %1951 = vmatprep.subr.bf16.mxu1 %v2215_v14  ;;  %p2161_p3 = pnand %p2160_p2, %p2154_p13 }
  0x27   : > { %1915 = vmatprep.subr.mxu0 %v431_v8 }
  0x29   : > { %1952 = vmatpush3.bf16.msra.mxu1 %v2107_v21  ;;  %v2129_v21 = vld [vmem:[%s2683_s7 + $0x40] ss:$8 sps:$4 sm:$0xff]  }
  0x2a   : > { %1953 = vmatprep.subr.bf16.mxu1 %v2215_v14 }
  0x2d   : > { %1954 = vmatpush3.bf16.msra.mxu1 %v2108_v38  ;;  %v1531_v38 = vld [vmem:[%s2685_s9 + $0x18] sm:$0xff] }
  0x2e   : > { %1979 = vmatprep.subr.bf16.mxu1 %v2215_v14 }
  0xf4   : > { %v1902_v9 = vpop.f32.mrb[0].mxu0 }
  0xf5   : > { %v507_v10 = vpop.f32.mrb[1].mxu0 }
  0xf6   : > { %1912 = vmatprep.mubr.msk.f32.mxu0 %vm597_vm1, %v507_v10 }
  0xf7   : > { %1913 = vmatmul.mubr.msk.f32.vlgmr.msra.gmra.mrb[4].mxu0 %vm597_vm1, %v1902_v9 }
  0xf8   : > { %1916 = vmatpush3.msra.mxu0 %v431_v8  ;;  %1917 = vmatprep.mubr.msk.f32.mxu0 %vm597_vm1, %v429_v0  ;;  %v1909_v12 = vpop.f32.mrb[2].mxu0  ;;  %v1786_v0 = vld [vmem:[%s2682_s6] ss:$0 sm:$0xff] }
  0xf9   : > { %1920 = vmatprep.subr.mxu0 %v433_v11  ;;  %v588_v13 = vpop.f32.mrb[3].mxu0 }
  0xff   : > { %1918 = vmatmul.mubr.msk.f32.vlgmr.msra.gmra.mrb[4].mxu0 %vm597_vm1, %v430_v1 }
 0x100   : > { %1921 = vmatpush3.msra.mxu0 %v433_v11  ;;  %1922 = vmatprep.mubr.msk.f32.mxu0 %vm597_vm1, %v588_v13  ;;  %v2119_v11 = vld [vmem:[%s2683_s7 + $0x4] ss:$8 sps:$4 sm:$0xff]   ;;  %v2122_v13 = vld [vmem:[%s2683_s7 + $0x14] ss:$8 sps:$4 sm:$0xff]  }
 0x107   : > { %1923 = vmatmul.mubr.msk.f32.vlgmr.msra.gmra.mrb[4].mxu0 %vm597_vm1, %v1909_v12  ;;  %v2117_v12 = vld [vmem:[%s2683_s7] ss:$8 sps:$4 sm:$0xff]  }
 0x108   : > { %1929 = vmatprep.mubr.msk.f32.mxu0 %vm434_vm0, %v425_v2 }
 0x1da   : > { %v1924_v23 = vpop.f32.mrb[4].mxu0 }
 0x1db   : > { %v851_v24 = vadd.f32 %v1924_v23, %v1757_v22  ;;  %v832_v25 = vpop.f32.mrb[5].mxu0  ;;  %v2132_v23 = vld [vmem:[%s2683_s7 + $0x50] ss:$8 sps:$4 sm:$0xff]  }
 0x1dc   : > { %v850_v26 = vadd.f32 %v1757_v22, %v832_v25  ;;  %v2134_v22 = vld [vmem:[%s2683_s7 + $0x54] ss:$8 sps:$4 sm:$0xff]   ;;  %v2135_v25 = vld [vmem:[%s2683_s7 + $0x60] ss:$8 sps:$4 sm:$0xff]  }
 0x1dd   : > { %v853_v27 = vmax.f32 %v851_v24, 0.0  ;;  %v2137_v24 = vld [vmem:[%s2683_s7 + $0x64] ss:$8 sps:$4 sm:$0xff]  }
 0x1de   : > { %v852_v28 = vmax.f32 %v850_v26, 0.0  ;;  %v2140_v26 = vld [vmem:[%s2683_s7 + $0x74] ss:$8 sps:$4 sm:$0xff]  }
 0x1e0   : > { %v2007_v29 = vpack.c.bf16 %v853_v27, %v852_v28  ;;  %v2138_v27 = vld [vmem:[%s2683_s7 + $0x70] ss:$8 sps:$4 sm:$0xff]   ;;  %v1544_v28 = vld [vmem:[%s2685_s9 + $0x80] sm:$0xff] }
 0x1e2   : > { %2008 = vmatprep.subr.bf16.mxu0 %v2007_v29 }
 0x1e3   : > { %2010 = vmatpush3.bf16.msra.mxu0 %v2007_v29 }
 0x1e4   : > { %2012 = vmatprep.subr.bf16.mxu0 %v2007_v29 }
 0x1e6   : > { %1930 = vmatmul.mubr.msk.f32.vlgmr.msra.gmra.mrb[6].mxu0 %vm434_vm0, %v2339_v4 }
 0x1e7   : > { %2014 = vmatpush3.bf16.msra.mxu0 %v2007_v29  ;;  %1936 = vmatprep.mubr.msk.f32.mxu0 %vm434_vm0, %v2341_v5 }
 0x1e8   : > { %1959 = vmatprep.subr.bf16.mxu0 %v2215_v14 }
 0x1ea   : > { %1937 = vmatmul.mubr.msk.f32.vlgmr.msra.gmra.mrb[8].mxu0 %vm434_vm0, %v2346_v7 }
 0x1eb   : > { %1960 = vmatpush3.bf16.msra.mxu0 %v2093_v30  ;;  %1975 = vmatprep.mubr.msk.bf16.mxu0 %vm2216_vm2, %v2215_v14  ;;  %v1528_v30 = vld [vmem:[%s2685_s9] sm:$0xff] }
 0x1ec   : > { %1961 = vmatprep.subr.bf16.mxu0 %v2215_v14 }
 0x1ef   : > { %1962 = vmatpush3.bf16.msra.mxu0 %v2094_v31 }
 0x1f0   : > { %1963 = vmatprep.subr.bf16.mxu0 %v2215_v14 }
 0x1f3   : > { %1964 = vmatpush3.bf16.msra.mxu0 %v2095_v32  ;;  %v1529_v32 = vld [vmem:[%s2685_s9 + $0x8] sm:$0xff] }
 0x1f4   : > { %1965 = vmatprep.subr.bf16.mxu0 %v2215_v14 }
 0x1f7   : > { %1966 = vmatpush3.bf16.msra.mxu0 %v2096_v33  ;;  %v1546_v33 = vld [vmem:[%s2685_s9 + $0x90] sm:$0xff] }
 0x1f8   : > { %1967 = vmatprep.subr.bf16.mxu0 %v2215_v14 }
 0x1fb   : > { %1968 = vmatpush3.bf16.msra.mxu0 %v2097_v34  ;;  %v1547_v34 = vld [vmem:[%s2685_s9 + $0x98] sm:$0xff] }
 0x1fc   : > { %1969 = vmatprep.subr.bf16.mxu0 %v2215_v14 }
 0x1ff   : > { %1970 = vmatpush3.bf16.msra.mxu0 %v2098_v35  ;;  %v2017_v35 = vpack.c.bf16 %v1529_v32, %v1528_v30  ;;  %v1556_v32 = vld [vmem:[%s2685_s9 + $0xe0] sm:$0xff] }
 0x200   : > { %1971 = vmatprep.subr.bf16.mxu0 %v2215_v14 }
 0x203   : > { %1972 = vmatpush3.bf16.msra.mxu0 %v2099_v36  ;;  %v2019_v36 = vpack.c.bf16 %v1547_v34, %v1546_v33  ;;  %v1540_v34 = vld [vmem:[%s2685_s9 + $0x60] sm:$0xff] }
 0x204   : > { %1973 = vmatprep.subr.bf16.mxu0 %v2215_v14 }
 0x207   : > { %1974 = vmatpush3.bf16.msra.mxu0 %v2100_v37  ;;  %v1530_v37 = vld [vmem:[%s2685_s9 + $0x10] sm:$0xff] }
 0x208   : > { %1481 = vmatprep.subr.bf16.mxu0 %v2119_v11 }
 0x20a   : > { %1976 = vmatmul.mubr.bf16.vlgmr.msra.gmra.mrb[12].mxu0 %v2007_v29  ;;  %v1545_v29 = vld [vmem:[%s2685_s9 + $0x88] sm:$0xff] }
 0x20b   : > { %1482 = vmatpush1.bf16.msra.mxu0 %v2117_v12  ;;  %1513 = vmatprep.mubr.bf16.mxu0 %v2217_v20  ;;  %v2015_v31 = vpack.c.bf16 %v1545_v29, %v1544_v28 }
 0x20c   : > { %1483 = vmatprep.subr.bf16.mxu0 %v2122_v13 }
 0x2b9   : > { %v1931_v39 = vpop.f32.mrb[6].mxu0 }
 0x2ba   : > { %v968_v40 = vpop.f32.mrb[7].mxu0 }
 0x2bb   : > { %v1053_v42 = vpack.c.bf16 %v1931_v39, %v968_v40  ;;  %v1548_v39 = vld [vmem:[%s2685_s9 + $0xa0] sm:$0xff]  ;;  %v1549_v40 = vld [vmem:[%s2685_s9 + $0xa8] sm:$0xff] }
 0x2bd   : > { %1956 = vmatmul.mubr.bf16.vlgmr.msra.gmra.mrb[0].mxu1 %v1053_v42  ;;  %v1938_v43 = vpop.f32.mrb[8].mxu0  ;;  %v2023_v42 = vpack.c.bf16 %v1549_v40, %v1548_v39  ;;  %v1542_v40 = vld [vmem:[%s2685_s9 + $0x70] sm:$0xff] }
 0x2be   : > { %1980 = vmatpush3.bf16.msra.mxu1 %v2109_v41  ;;  %v1043_v45 = vpop.f32.mrb[9].mxu0  ;;  %1995 = vmatprep.mubr.msk.bf16.mxu1 %vm2216_vm2, %v2215_v14  ;;  %v2021_v41 = vpack.c.bf16 %v1531_v38, %v1530_v37  ;;  %v1558_v37 = vld [vmem:[%s2685_s9 + $0xf0] sm:$0xff]  ;;  %v1559_v38 = vld [vmem:[%s2685_s9 + $0xf8] sm:$0xff] }
 0x2bf   : > { %1981 = vmatprep.subr.bf16.mxu1 %v2215_v14  ;;  %v1054_v46 = vpack.c.bf16 %v1938_v43, %v1043_v45  ;;  %v1532_v43 = vld [vmem:[%s2685_s9 + $0x20] sm:$0xff]  ;;  %v1550_v45 = vld [vmem:[%s2685_s9 + $0xb0] sm:$0xff]  ;;  %v2043_v39 = vpack.c.bf16 %v1559_v38, %v1558_v37 }
 0x2c2   : > { %1982 = vmatpush3.bf16.msra.mxu1 %v2110_v44  ;;  %v1533_v44 = vld [vmem:[%s2685_s9 + $0x28] sm:$0xff] }
 0x2c3   : > { %1983 = vmatprep.subr.bf16.mxu1 %v2215_v14 }
 0x2c6   : > { %1984 = vmatpush3.bf16.msra.mxu1 %v2111_v47  ;;  %v2025_v47 = vpack.c.bf16 %v1533_v44, %v1532_v43  ;;  %v1471_v43 = vlaneseq }
 0x2c7   : > { %1985 = vmatprep.subr.bf16.mxu1 %v2215_v14 }
 0x2c8   : > { %v1472_v44 = vshrl.u32 %v1471_v43, 7 }
 0x2ca   : > { %1986 = vmatpush3.bf16.msra.mxu1 %v2112_v48 }
 0x2cb   : > { %1987 = vmatprep.subr.bf16.mxu1 %v2215_v14 }
 0x2ce   : > { %1988 = vmatpush3.bf16.msra.mxu1 %v2113_v49  ;;  %v1534_v49 = vld [vmem:[%s2685_s9 + $0x30] sm:$0xff] }
 0x2cf   : > { %1989 = vmatprep.subr.bf16.mxu1 %v2215_v14 }
 0x2d2   : > { %1990 = vmatpush3.bf16.msra.mxu1 %v2114_v50  ;;  %v1535_v50 = vld [vmem:[%s2685_s9 + $0x38] sm:$0xff] }
 0x2d3   : > { %1991 = vmatprep.subr.bf16.mxu1 %v2215_v14 }
 0x2d6   : > { %1992 = vmatpush3.bf16.msra.mxu1 %v2115_v51  ;;  %v1552_v51 = vld [vmem:[%s2685_s9 + $0xc0] sm:$0xff] }
 0x2d7   : > { %1993 = vmatprep.subr.bf16.mxu1 %v2215_v14  ;;  %v2120_v14 = vld [vmem:[%s2683_s7 + $0x10] ss:$8 sps:$4 sm:$0xff]  }
 0x2d8   : > { %1484 = vmatpush1.bf16.msra.mxu0 %v2120_v14 }
 0x2d9   : > { %1485 = vmatprep.subr.bf16.mxu0 %v2125_v16 }
 0x2da   : > { %1994 = vmatpush3.bf16.msra.mxu1 %v2116_v52  ;;  %v1553_v52 = vld [vmem:[%s2685_s9 + $0xc8] sm:$0xff] }
 0x2db   : > { %2016 = vmatprep.subr.bf16.mxu1 %v2015_v31 }
 0x2dc   : > { %1486 = vmatpush1.bf16.msra.mxu0 %v2123_v15 }
 0x2dd   : > { %1996 = vmatmul.mubr.bf16.vlgmr.msra.gmra.mrb[4].mxu1 %v1054_v46  ;;  %v1226_v53 = vpop.f32.mrb[12].mxu0  ;;  %1487 = vmatprep.subr.bf16.mxu0 %v2128_v17  ;;  %v1551_v46 = vld [vmem:[%s2685_s9 + $0xb8] sm:$0xff] }
 0x2de   : > { %v1977_v54 = vpop.f32.mrb[13].mxu0  ;;  %2018 = vmatpush3.bf16.msra.mxu1 %v2017_v35  ;;  %v2027_v48 = vpack.c.bf16 %v1551_v46, %v1550_v45  ;;  %v1541_v35 = vld [vmem:[%s2685_s9 + $0x68] sm:$0xff]  ;;  %v1473_v45 = vsub.s32 0, %v1472_v44  ;;  %v1389_v46 = vld [vmem:[%s2684_s8] sm:$0x3] }
 0x2df   : > { %v1229_v55 = vpop.f32.mrb[14].mxu0  ;;  %2020 = vmatprep.subr.bf16.mxu1 %v2019_v36  ;;  %v2031_v54 = vpack.c.bf16 %v1553_v52, %v1552_v51  ;;  %v2041_v36 = vpack.c.bf16 %v1541_v35, %v1540_v34 }
 0x2e0   : > { %v1978_v56 = vpop.f32.mrb[15].mxu0  ;;  %1488 = vmatpush1.bf16.msra.mxu0 %v2126_v18 }
 0x2e1   : > { %1489 = vmatprep.subr.bf16.mxu0 %v2131_v19  ;;  %v1537_v56 = vld [vmem:[%s2685_s9 + $0x48] sm:$0xff] }
 0x2e2   : > { %2022 = vmatpush3.bf16.msra.mxu1 %v2021_v41  ;;  %v1543_v41 = vld [vmem:[%s2685_s9 + $0x78] sm:$0xff] }
 0x2e3   : > { %2024 = vmatprep.subr.bf16.mxu1 %v2023_v42  ;;  %v2045_v42 = vpack.c.bf16 %v1543_v41, %v1542_v40 }
 0x2e4   : > { %1490 = vmatpush1.bf16.msra.mxu0 %v2129_v21 }
 0x2e5   : > { %1491 = vmatprep.subr.bf16.mxu0 %v2134_v22 }
 0x2e6   : > { %2026 = vmatpush3.bf16.msra.mxu1 %v2025_v47  ;;  %v1477_v47 = vsub.s32 1, %v1472_v44 }
 0x2e7   : > { %2028 = vmatprep.subr.bf16.mxu1 %v2027_v48  ;;  %v1474_v48 = vrot.slane %v1389_v46, %v1473_v45 }
 0x2e8   : > { %1492 = vmatpush1.bf16.msra.mxu0 %v2132_v23 }
 0x2e9   : > { %1493 = vmatprep.subr.bf16.mxu0 %v2137_v24 }
 0x2ec   : > { %1494 = vmatpush1.bf16.msra.mxu0 %v2135_v25 }
 0x2ed   : > { %1495 = vmatprep.subr.bf16.mxu0 %v2140_v26 }
 0x2f0   : > { %1496 = vmatpush1.bf16.msra.mxu0 %v2138_v27 }
 0x390   : > { %v1137_v57 = vpop.f32.mrb[0].mxu1 }
 0x391   : > { %v1227_v58 = vadd.f32 %v1226_v53, %v1137_v57  ;;  %v1957_v59 = vpop.f32.mrb[1].mxu1  ;;  %v2029_v53 = vpack.c.bf16 %v1535_v50, %v1534_v49  ;;  %v1554_v57 = vld [vmem:[%s2685_s9 + $0xd0] sm:$0xff]  ;;  %v1478_v49 = vrot.slane %v1389_v46, %v1477_v47 }
 0x392   : > { %v1140_v60 = vpop.f32.mrb[2].mxu1 }
 0x393   : > { %v1230_v61 = vadd.f32 %v1229_v55, %v1140_v60  ;;  %v1958_v62 = vpop.f32.mrb[3].mxu1  ;;  %v1536_v55 = vld [vmem:[%s2685_s9 + $0x40] sm:$0xff]  ;;  %2030 = vmatpush3.bf16.msra.mxu1 %v2029_v53 }
 0x394   : > { %v2033_v59 = vpack.c.bf16 %v1537_v56, %v1536_v55  ;;  %2032 = vmatprep.subr.bf16.mxu1 %v2031_v54  ;;  %v1539_v62 = vld [vmem:[%s2685_s9 + $0x58] sm:$0xff] }
 0x397   : > { %2034 = vmatpush3.bf16.msra.mxu1 %v2033_v59 }
 0x3b0   : > { %v1315_v63 = vpop.f32.mrb[4].mxu1 }
 0x3b1   : > { %v1322_v1 = vadd.f32 %v1315_v63, %v1227_v58  ;;  %v1997_v2 = vpop.f32.mrb[5].mxu1  ;;  %v1555_v58 = vld [vmem:[%s2685_s9 + $0xd8] sm:$0xff] }
 0x3b2   : > { %v1318_v3 = vpop.f32.mrb[6].mxu1  ;;  %v2035_v60 = vpack.c.bf16 %v1555_v58, %v1554_v57 }
 0x3b3   : > { %v1323_v4 = vadd.f32 %v1318_v3, %v1230_v61  ;;  %v1998_v5 = vpop.f32.mrb[7].mxu1  ;;  %v1331_v6 = vadd.f32 %v1786_v0, %v1322_v1  ;;  %v1538_v61 = vld [vmem:[%s2685_s9 + $0x50] sm:$0xff] }
 0x3b4   : > { %v2037_v63 = vpack.c.bf16 %v1539_v62, %v1538_v61  ;;  %2036 = vmatprep.subr.bf16.mxu1 %v2035_v60  ;;  %v1560_v62 = vld [vmem:[%s2686_s10] sm:$0x1] }
 0x3b5   : > { %v1332_v7 = vadd.f32 %v1786_v0, %v1323_v4  ;;  %v1333_v8 = vmul.f32 %v1331_v6, %v1331_v6 }
 0x3b6   : > { %2038 = vmatpush3.bf16.msra.mxu1 %v2037_v63 }
 0x3b7   : > { %1335 = vadd.xlane.f32.xlu0 %v1333_v8  ;;  %v2475_v9 = vmax.f32 %v1331_v6, %v1332_v7  ;;  %v1334_v10 = vmul.f32 %v1332_v7, %v1332_v7 }
 0x3b9   : > { %v1365_v18 = vrot.slane %v2475_v9, 4 }
 0x3bb   : > { %1337 = vadd.xlane.f32.xlu0 %v1334_v10  ;;  %v1366_v21 = vmax.f32 %v2475_v9, %v1365_v18  ;;  %v1557_v9 = vld [vmem:[%s2685_s9 + $0xe8] sm:$0xff] }
 0x3bc   : > { %v2039_v33 = vpack.c.bf16 %v1557_v9, %v1556_v32 }
 0x3bd   : > { %v1367_v24 = vrot.slane %v1366_v21, 2 }
 0x3be   : > { %2040 = vmatprep.subr.bf16.mxu1 %v2039_v33 }
 0x3bf   : > { %v1368_v25 = vmax.f32 %v1366_v21, %v1367_v24  ;;  %2042 = vmatpush3.bf16.msra.mxu1 %v2041_v36 }
 0x3c0   : > { %2044 = vmatprep.subr.bf16.mxu1 %v2043_v39 }
 0x3c1   : > { %v1369_v26 = vrot.slane %v1368_v25, 1 }
 0x3c3   : > { %v1370_v29 = vmax.f32 %v1368_v25, %v1369_v26  ;;  %2046 = vmatpush3.bf16.msra.mxu1 %v2045_v42 }
 0x444   : > { %v1336_v0 = vpop.xlane.xlu0 %1335 }
 0x445   : > { %2141 = vrsqrt.f32 %v1336_v0  ;;  %vm1341_vm3 = vcmp.eq.f32.partialorder %v1336_v0, inf  ;;  %v1344_v7 = vand.u32 2147483648, %v1336_v0  ;;  %vm1343_vm5 = vcmp.eq.f32.partialorder %v1336_v0, 0.0 }
 0x448   : > { %v1338_v1 = vpop.xlane.xlu0 %1337 }
 0x449   : > { %2143 = vrsqrt.f32 %v1338_v1  ;;  %vm1348_vm4 = vcmp.eq.f32.partialorder %v1338_v1, inf  ;;  %v1351_v8 = vand.u32 2147483648, %v1338_v1  ;;  %vm1350_vm6 = vcmp.eq.f32.partialorder %v1338_v1, 0.0 }
 0x44f   : > { %v2142_v2 = vpop.eup %2141 }
 0x450   : > { %v1340_v3 = vmul.f32 %v2142_v2, %v1336_v0 }
 0x452   : > { %v1342_v5 = vsel %vm1341_vm3, %v1336_v0, %v1340_v3 }
 0x453   : > { %v2144_v4 = vpop.eup %2143  ;;  %v1345_v11 = vsel %vm1343_vm5, %v1344_v7, %v1342_v5 }
 0x454   : > { %v1347_v6 = vmul.f32 %v2144_v4, %v1338_v1 }
 0x456   : > { %v1349_v10 = vsel %vm1348_vm4, %v1338_v1, %v1347_v6 }
 0x457   : > { %v1352_v12 = vsel %vm1350_vm6, %v1351_v8, %v1349_v10 }
 0x458   : > { %v1353_v13 = vadd.f32 %v1352_v12, %v1345_v11 }
 0x45a   : > { %v1354_v14 = vrot.slane %v1353_v13, 4 }
 0x45c   : > { %v1355_v15 = vadd.f32 %v1354_v14, %v1353_v13 }
 0x45e   : > { %v1356_v16 = vrot.slane %v1355_v15, 2 }
 0x460   : > { %v1357_v17 = vadd.f32 %v1356_v16, %v1355_v15 }
 0x462   : > { %v1358_v19 = vrot.slane %v1357_v17, 1 }
 0x464   : > { %v1359_v20 = vadd.f32 %v1358_v19, %v1357_v17 }
 0x466   : > { %v1360_v22 = vmul.f32 0.0625, %v1359_v20 }
 0x468   : > { %v1361_v23 = vadd.f32 1e-12, %v1360_v22 }
 0x46a   : > { %2145 = vrcp.f32 %v1361_v23 }
 0x474   : > { %v2146_v27 = vpop.eup %2145 }
 0x475   : > { %v1363_v28 = vmul.f32 11.313708, %v2146_v27 }
 0x477   : > { %v1371_v30 = vmul.f32 %v1370_v29, %v1363_v28 }
 0x479   : > { %v1372_v31 = vpack.c.bf16 %v1371_v30, %v1371_v30 }
 0x47b   : > { %1514 = vmatmul.mubr.bf16.vlgmr.msra.gmra.mrb[16].mxu0 %v1372_v31 }
 0x54e   : > { %v1515_v50 = vpop.f32.mrb[16].mxu0 }
 0x54f   : > { %v1516_v51 = vadd.f32 %v1515_v50, %v1474_v48  ;;  %v1517_v52 = vpop.f32.mrb[17].mxu0 }
 0x550   : > { %v1518_v53 = vadd.f32 %v1517_v52, %v1478_v49  ;;  %v1519_v54 = vpop.f32.mrb[18].mxu0 }
 0x551   : > { %v1524_v55 = vmul.f32 0.01, %v1516_v51  ;;  %v1520_v56 = vpop.f32.mrb[19].mxu0  ;;  %vm1522_vm7 = vcmp.gt.f32.partialorder %v1516_v51, 0.0 }
 0x552   : > { %v1525_v57 = vmul.f32 0.01, %v1518_v53  ;;  %vm1523_vm8 = vcmp.gt.f32.partialorder %v1518_v53, 0.0 }
 0x553   : > { %v1526_v59 = vsel %vm1522_vm7, %v1516_v51, %v1524_v55 }
 0x554   : > { %v1527_v58 = vsel %vm1523_vm8, %v1518_v53, %v1525_v57 }
 0x555   : > { %1625 = vmatprep.mubr.f32.mxu1 %v1527_v58 }
 0x556   : > { %1626 = vmatmul.mubr.f32.vlgmr.msra.gmra.mrb[8].mxu1 %v1526_v59 }
 0x629   : > { %v1893_v60 = vpop.f32.mrb[8].mxu1 }
 0x62a   : > { %v1894_v61 = vpop.f32.mrb[9].mxu1 }
 0x62b   : > { %v1895_v63 = vadd.f32 %v1894_v61, %v1893_v60 }
 0x62d   : > { %v1628_v0 = vadd.f32 %v1895_v63, %v1560_v62 }
 0x62f   : > { %v1632_v1 = vsel %vm1631_vm9, %v1628_v0, -inf }
 0x630   : > { %1633 = vmax.xlane.f32.xlu1 %v1632_v1 }
 0x6bd   : > { %v1634_v2 = vpop.xlane.xlu1 %1633 }
 0x6be   : > { %v1635_v3 = vsub.f32 %v1628_v0, %v1634_v2 }
 0x6c0   : > { %v1636_v4 = vmul.f32 1.442695, %v1635_v3 }
 0x6c2   : > { %2147 = vpow2.f32 %v1636_v4 }
 0x6cc   : > { %v2148_v5 = vpop.eup %2147 }
 0x6cd   : > { %v1638_v6 = vsel %vm1631_vm9, %v2148_v5, 0.0 }
 0x6ce   : > { %1639 = vadd.xlane.f32.xlu1 %v1638_v6 }
 0x75b   : > { %v1640_v7 = vpop.xlane.xlu1 %1639 }
 0x75c   : > { %2149 = vlog2.f32 %v1640_v7 }
 0x766   : > { %v2150_v8 = vpop.eup %2149 }
 0x767   : > { %v1642_v10 = vmul.f32 0.6931472, %v2150_v8 }
 0x769   : > { %v1643_v11 = vsub.f32 %v1635_v3, %v1642_v10 }
 0x76b   : > { %1644 = vst [vmem:[%s408_s15] sm:$0x1] %v1643_v11 }
 0x76c   : > { %2164 = shalt.err (!%p2161_p3)
}
 0x76d   : > { %s2165_s26 = scalar_lea.hbm %s2634_s25, 16  ;;  %s2169_s22 = scalar_lea.hbm %s2687_s11, 32 }
 0x76e   : > { %p2166_p4 = scmp.ne.s32.totalorder %s2634_s25, %s2165_s26  ;;  %p2170_p9 = scmp.lt.u32.totalorder %s2634_s25, %s2687_s11 }
 0x76f   : > { %p2171_p10 = scmp.lt.u32.totalorder %s2169_s22, %s2165_s26  ;;  %p2173_p12 = scmp.lt.u32.totalorder %s2165_s26, %s2634_s25 }
 0x770   : > { %p2167_p7 = pnand %p2166_p4, %p2317_p5 }
 0x771   : > { %p2172_p11 = por %p2171_p10, %p2170_p9 }
 0x772   : > { %p2168_p8 = pneg %p2167_p7 }
 0x773   : > { %p2174_p13 = por %p2173_p12, %p2172_p11 }
 0x775   : > { %p2175_p0 = pnand %p2174_p13, %p2168_p8 }
 0x777   : > { %2178 = shalt.err (!%p2175_p0)
}
 0x778   : > { %2051 = dma.vmem_to_hbm [thread:$0]  (%p2317_p5), %s2636_s16, 16, %s2634_s25, %s1646_s29  }
 0x779 PF: > { %p2057_p1 = scmp.ge.s32.totalorder %s2213_s20, 2  ;;  %s1670_s12 = sand.u32 1, %s2201_s17  }
 0x77a   : > { %s1671_s30 = scalar_lea.sflag [#allocation3], %s1670_s12 }
 0x77b   : > { %p2054_p2 = pnand %p2057_p1, %p2321_p6 }
 0x77d   : > { %2196 = dma.done.wait (!%p2054_p2), %s1671_s30, 16  }
 0x77e   : > { %2198 = vsyncadd (!%p2054_p2), %s1671_s30, 4294967280  ;;  %s2691_s13 = sld [smem:[#allocation5_spill]]  ;;  %p21_p3 = scmp.ge.s32.totalorder %s2304_s23, 4  }
 0x77f   : > { %s2692_s17 = smov %s2205_s18  ;;  %s2693_s18 = smov %s2209_s19 }
 0x780   : > { %s2695_s20 = smov %s2304_s23  ;;  %23 = sbr.rel (!%p21_p3) target bundleno = 3 (0x3), region = 105 }
 0x784   : > { %s2694_s19 = smov %s2691_s13 }
 0x787   :  { %1675 = vsyncpa [#allocation3], 1 }
 0x788   :  { %1677 = vsyncpa [#allocation3 + $0x1], 1 }

</bundles_post_ra>
